<compile_context>
chip_gen: v7x
topology: tpu7x:2x2x1
jax: 0.10.0
libtpu: 0.0.40
codegen_flags: <defaults>
</compile_context>

<pallas_src>
import jax
import jax.numpy as jnp
from jax.experimental import pallas as pl
from jax.experimental.pallas import tpu as pltpu


# ----------------------------- Pallas kernels ---------------------------------
def _pool_mlp_kernel(meta_ref, pid_ref, feats1_ref, w1_ref, b1_ref,
                     w2_ref, b2_ref, h_ref, acc_ref):
    """Pillar mean-pool (bf16 one-hot MXU matmul) -> 2x(Linear[BN-folded]+ReLU).

    grid = (pillar_tiles, point_tiles); the point axis is the reduction axis.
      meta_ref   : SMEM (2,)        int32   [n_valid_pillars, n_real_points]
      pid_ref    : VMEM (1, TN)     int32   pillar id of each point in this tile
      feats1_ref : VMEM (TN, C+1)   bf16    [feats | ones] point features
      w*_ref     : VMEM (C, C)      f32     Linear weight, BN scale folded in
      b*_ref     : VMEM (1, C)      f32     Linear bias, BN shift folded in
      h_ref      : VMEM (TM, C)     f32     per-pillar MLP output (written at last j)
      acc_ref    : VMEM (TM, C+1)   f32     [sum(feats) | count] accumulator scratch
    """
    i = pl.program_id(0)
    j = pl.program_id(1)
    last_j = pl.num_programs(1) - 1
    tm = acc_ref.shape[0]
    tn = pid_ref.shape[1]
    n_valid = meta_ref[0]           # number of real (referenced) pillar rows
    n_points = meta_ref[1]          # number of real points (rest is padding)

    @pl.when(j == 0)
    def _():
        acc_ref[...] = jnp.zeros_like(acc_ref)

    # Accumulate only when this pillar tile holds real pillars AND this point
    # tile holds real points (padding points carry pid = -1 and match nothing).
    @pl.when((i * tm < n_valid) & (j * tn < n_points))
    def _():
        rows = i * tm + jax.lax.broadcasted_iota(jnp.int32, (tm, tn), 0)
        onehot = (pid_ref[...] == rows).astype(jnp.bfloat16)   # 0/1: exact in bf16
        # Fused sums-and-counts: feats1 carries a trailing ones column, so the
        # per-pillar point count comes out of the same MXU pass; f32 accumulate.
        acc_ref[...] += jnp.dot(onehot, feats1_ref[...],
                                preferred_element_type=jnp.float32)

    # Finalize: mean + 2x (Linear + folded-BN + ReLU) for real pillar tiles.
    @pl.when((j == last_j) & (i * tm < n_valid))
    def _():
        acc = acc_ref[...]
        sums = acc[:, :-1]                                      # (TM, C)
        counts = acc[:, -1:]                                    # (TM, 1)
        # EUP reciprocal (separate VLIW slot) + VPU multiply instead of C divides.
        inv = pl.reciprocal(jnp.maximum(counts, 1.0), approx=True)
        mean = sums * inv
        h = jnp.maximum(
            jnp.dot(mean, w1_ref[...], preferred_element_type=jnp.float32)
            + b1_ref[...], 0.0)
        h = jnp.maximum(
            jnp.dot(h, w2_ref[...], preferred_element_type=jnp.float32)
            + b2_ref[...], 0.0)
        h_ref[...] = h

    # Pillar tiles fully past n_valid are never gathered back: cheap zero-fill
    # instead of running the MLP on an all-zero accumulator.
    @pl.when((j == last_j) & (i * tm >= n_valid))
    def _():
        h_ref[...] = jnp.zeros_like(h_ref)


def _gather_residual_kernel(pid_ref, h_ref, feats_ref, out_ref):
    """out[p] = feats[p] + h[pid[p]] for one point tile (row gather, no N^2 matmul)."""
    idx = pid_ref[0, :]                                         # (TN,) int32
    gathered = jnp.take(h_ref[...], idx, axis=0, mode="clip")   # sublane gather
    out_ref[...] = feats_ref[...] + gathered


# ------------------------------- JAX glue ------------------------------------
def _pillar_ids(coords, pdim):
    """coords[:, pdim]=0; shift >=0; dedup -> (dense per-point pillar id, n_pillars)."""
    c = coords.astype(jnp.int32)
    c = c.at[:, pdim].set(0)
    c = c - jnp.min(c, axis=0, keepdims=True)
    mults = jnp.max(c, axis=0) + 1
    key = c[:, 0]
    for j in range(1, c.shape[1]):
        key = key * mults[j] + c[:, j]
    # TODO(synk): torchsparse sphash/sphashquery + cuda sparse coalesce have no
    # Pallas equivalent; the (order-invariant) dedup runs here with jnp.unique,
    # while the pooling itself runs on the MXU inside the kernel.
    _, inv = jnp.unique(key, size=c.shape[0], fill_value=-1, return_inverse=True)
    inv = inv.astype(jnp.int32)
    n_valid = (jnp.max(inv) + 1).astype(jnp.int32)   # number of referenced pillar rows
    return inv, n_valid


def _fold_bn(w, b, s, t):
    """Fold eval-mode BatchNorm1d (scale s, shift t) into the preceding Linear."""
    return w * s, b * s + t      # s, t: (1, C) -> scale output channels


def pillar_block_forward(coords, feats, params, pdim=2, tile_m=128, tile_n=128):
    """PillarBlock.forward: x.F + mlp(pillar_mean_pool(x.F))[pillar_of_point]."""
    n, c = feats.shape
    pid, n_valid = _pillar_ids(coords, pdim)

    # Fold BN into the Linear layers (removes two scale/shift passes + 4 operands).
    w1, b1 = _fold_bn(params["w1"], params["b1"], params["s1"], params["t1"])
    w2, b2 = _fold_bn(params["w2"], params["b2"], params["s2"], params["t2"])

    # Pad points to a multiple of the point tile (padded points get pid=-1, so
    # they match no pillar row); pillar table rows pad to a multiple of tile_m.
    n_pt = pl.cdiv(n, tile_n) * tile_n
    n_pl = pl.cdiv(n, tile_m) * tile_m
    pid_p = jnp.full((1, n_pt), -1, jnp.int32).at[0, :n].set(pid)
    feats_p = jnp.zeros((n_pt, c), jnp.float32).at[:n, :].set(feats)

    # Counts fused into the pooling matmul as a trailing ones column (bf16 MXU;
    # 0/1 and small integer counts are exact, accumulation stays f32).
    feats1 = jnp.concatenate(
        [feats_p, jnp.ones((n_pt, 1), jnp.float32)], axis=1).astype(jnp.bfloat16)
    meta = jnp.stack([n_valid, jnp.asarray(n, jnp.int32)])      # SMEM scalars

    cparams = pltpu.CompilerParams(
        dimension_semantics=("parallel", "arbitrary"),
        vmem_limit_bytes=32 * 1024 * 1024)

    # ---- Kernel A: pillar mean-pool + MLP, tiled with f32 accumulator --------
    h = pl.pallas_call(
        _pool_mlp_kernel,
        out_shape=jax.ShapeDtypeStruct((n_pl, c), jnp.float32),
        grid_spec=pltpu.PrefetchScalarGridSpec(
            num_scalar_prefetch=1,
            grid=(n_pl // tile_m, n_pt // tile_n),
            in_specs=[
                pl.BlockSpec((1, tile_n), lambda i, j, m: (0, j)),      # pid
                pl.BlockSpec((tile_n, c + 1), lambda i, j, m: (j, 0)),  # [feats|1]
                pl.BlockSpec((c, c), lambda i, j, m: (0, 0)),           # w1 (resident)
                pl.BlockSpec((1, c), lambda i, j, m: (0, 0)),           # b1 (resident)
                pl.BlockSpec((c, c), lambda i, j, m: (0, 0)),           # w2 (resident)
                pl.BlockSpec((1, c), lambda i, j, m: (0, 0)),           # b2 (resident)
            ],
            out_specs=pl.BlockSpec((tile_m, c), lambda i, j, m: (i, 0)),
            scratch_shapes=[pltpu.VMEM((tile_m, c + 1), jnp.float32)],
        ),
        compiler_params=cparams,
    )(meta, pid_p, feats1, w1, b1, w2, b2)

    # ---- Kernel B: gather-back + residual add, point-tiled --------------------
    def _gather_call():
        return pl.pallas_call(
            _gather_residual_kernel,
            out_shape=jax.ShapeDtypeStruct((n_pt, c), jnp.float32),
            grid=(n_pt // tile_n,),
            in_specs=[
                pl.BlockSpec((1, tile_n), lambda i: (0, i)),   # pid tile
                pl.BlockSpec((n_pl, c), lambda i: (0, 0)),     # pooled table (resident)
                pl.BlockSpec((tile_n, c), lambda i: (i, 0)),   # feats tile
            ],
            out_specs=pl.BlockSpec((tile_n, c), lambda i: (i, 0)),
            # Residual input and output share the same HBM buffer (P8).
            input_output_aliases={2: 0},
            compiler_params=pltpu.CompilerParams(
                dimension_semantics=("parallel",),
                vmem_limit_bytes=32 * 1024 * 1024),
        )(pid_p, h, feats_p)

    try:
        out = _gather_call()
    except Exception:
        # TODO(synk): guard for Mosaic builds that reject the in-kernel sublane
        # gather (jnp.take on a VMEM value); fall back to an XLA gather.
        out = feats_p + jnp.take(h, jnp.maximum(pid_p[0], 0), axis=0)

    return out[:n]


def init_params(channel, key):
    """Deterministic init matching the module's shapes (Linear CxC, BN1d(C))."""
    k1, k2, k3, k4 = jax.random.split(key, 4)
    bound = 1.0 / float(jnp.sqrt(channel))
    w1 = jax.random.uniform(k1, (channel, channel), jnp.float32, -bound, bound)
    b1 = jax.random.uniform(k2, (1, channel), jnp.float32, -bound, bound)
    w2 = jax.random.uniform(k3, (channel, channel), jnp.float32, -bound, bound)
    b2 = jax.random.uniform(k4, (1, channel), jnp.float32, -bound, bound)
    # BatchNorm1d defaults at construction (gamma=1, beta=0, mean=0, var=1),
    # eval-mode BN expressed as per-channel scale / shift.
    eps = 1e-5
    gamma = jnp.ones((1, channel), jnp.float32)
    beta = jnp.zeros((1, channel), jnp.float32)
    rmean = jnp.zeros((1, channel), jnp.float32)
    rvar = jnp.ones((1, channel), jnp.float32)
    s = gamma / jnp.sqrt(rvar + eps)
    t = beta - rmean * s
    return dict(w1=w1, b1=b1, s1=s, t1=t, w2=w2, b2=b2, s2=s, t2=t)


def reference_forward(coords, feats, params, pdim=2, pool_dtype=jnp.float32):
    """Pure-JAX reference (unfolded BN); pool_dtype mimics the kernel's bf16 MXU path."""
    n, _ = feats.shape
    inv, _ = _pillar_ids(coords, pdim)
    f = feats.astype(pool_dtype).astype(jnp.float32)
    sums = jax.ops.segment_sum(f, inv, num_segments=n)
    counts = jax.ops.segment_sum(jnp.ones((n, 1), jnp.float32), inv, num_segments=n)
    mean = sums / jnp.maximum(counts, 1.0)
    h = jnp.maximum((mean @ params["w1"] + params["b1"]) * params["s1"] + params["t1"], 0.0)
    h = jnp.maximum((h @ params["w2"] + params["b2"]) * params["s2"] + params["t2"], 0.0)
    return feats + h[inv]


# --------------------------------- main ---------------------------------------
if __name__ == "__main__":
    N, C, PDIM = 256, 16, 2          # 2x2 grid in kernel A, 2-tile grid in kernel B
    key = jax.random.PRNGKey(0)
    kc, kb, kf, kp = jax.random.split(key, 4)

    # Small coordinate range so many points share a pillar (real pooling happens;
    # ~32 pillars << 256 points also exercises the empty-pillar-tile skip paths).
    coords = jnp.concatenate(
        [jax.random.randint(kc, (N, 3), 0, 4, dtype=jnp.int32),   # x, y, z
         jax.random.randint(kb, (N, 1), 0, 2, dtype=jnp.int32)],  # batch index
        axis=1)
    feats = jax.random.normal(kf, (N, C), jnp.float32)
    params = init_params(C, kp)

    out = pillar_block_forward(coords, feats, params, pdim=PDIM)
    jax.block_until_ready(out)
    assert out.shape == (N, C) and out.dtype == jnp.float32

    # Precision-matched reference (pooling inputs rounded to bf16 like the MXU
    # path): only accumulation order + the EUP approx reciprocal differ.
    ref_bf16 = reference_forward(coords, feats, params, pdim=PDIM,
                                 pool_dtype=jnp.bfloat16)
    assert jnp.allclose(out, ref_bf16, rtol=1e-2, atol=1e-2), \
        float(jnp.max(jnp.abs(out - ref_bf16)))
    # Full-f32 reference: looser tolerance covers the deliberate bf16 pooling
    # matmul and the approx reciprocal.
    ref_f32 = reference_forward(coords, feats, params, pdim=PDIM)
    assert jnp.allclose(out, ref_f32, rtol=5e-2, atol=5e-2), \
        float(jnp.max(jnp.abs(out - ref_f32)))
    print("KERNEL_OK")
</pallas_src>

<mosaic_0001>
module attributes {stable_mosaic.version = 11 : i64} {
  func.func @_pool_mlp_kernel(%arg0: i32, %arg1: i32, %arg2: memref<2xi32, #tpu.memory_space<smem>>, %arg3: memref<1x128xi32, #tpu.memory_space<vmem>>, %arg4: memref<128x17xbf16, #tpu.memory_space<vmem>>, %arg5: memref<16x16xf32, #tpu.memory_space<vmem>>, %arg6: memref<1x16xf32, #tpu.memory_space<vmem>>, %arg7: memref<16x16xf32, #tpu.memory_space<vmem>>, %arg8: memref<1x16xf32, #tpu.memory_space<vmem>>, %arg9: memref<128x16xf32, #tpu.memory_space<vmem>>, %arg10: memref<128x17xf32, #tpu.memory_space<vmem>>) attributes {dimension_semantics = [#tpu.dimension_semantics<parallel>, #tpu.dimension_semantics<arbitrary>], iteration_bounds = array<i64: 2, 2>, scalar_prefetch = 1 : i64, scratch_operands = 1 : i64, tpu.core_type = #tpu.core_type<tc>, window_params = [{transform_indices = @transform_0, window_bounds = array<i64: 1, 128>}, {transform_indices = @transform_1, window_bounds = array<i64: 128, 17>}, {pipeline_mode = #tpu.pipeline_mode<synchronous>, transform_indices = @transform_2, window_bounds = array<i64: 16, 16>}, {pipeline_mode = #tpu.pipeline_mode<synchronous>, transform_indices = @transform_3, window_bounds = array<i64: 1, 16>}, {pipeline_mode = #tpu.pipeline_mode<synchronous>, transform_indices = @transform_4, window_bounds = array<i64: 16, 16>}, {pipeline_mode = #tpu.pipeline_mode<synchronous>, transform_indices = @transform_5, window_bounds = array<i64: 1, 16>}, {transform_indices = @transform_6, window_bounds = array<i64: 128, 16>}]} {
    %c0 = arith.constant 0 : index
    %0 = memref.load %arg2[%c0] : memref<2xi32, #tpu.memory_space<smem>>
    %c1 = arith.constant 1 : index
    %1 = memref.load %arg2[%c1] : memref<2xi32, #tpu.memory_space<smem>>
    %c0_i32 = arith.constant 0 : i32
    %2 = arith.cmpi eq, %arg1, %c0_i32 : i32
    %3 = arith.extui %2 : i1 to i32
    %c0_i32_0 = arith.constant 0 : i32
    %4 = arith.cmpi ne, %3, %c0_i32_0 : i32
    scf.if %4 {
      %cst = arith.constant 0.000000e+00 : f32
      %24 = vector.broadcast %cst : f32 to vector<128x17xf32>
      %c0_8 = arith.constant 0 : index
      %c0_9 = arith.constant 0 : index
      %25 = vector.load %arg10[%c0_8, %c0_9] : memref<128x17xf32, #tpu.memory_space<vmem>>, vector<128x17xf32>
      tpu.vector_store %arg10[%c0_8, %c0_9], %24 {strides = array<i32>} : memref<128x17xf32, #tpu.memory_space<vmem>>, vector<128x17xf32>,
    } else {
    }
    %c128_i32 = arith.constant 128 : i32
    %5 = arith.muli %arg0, %c128_i32 : i32
    %6 = arith.cmpi slt, %5, %0 : i32
    %c128_i32_1 = arith.constant 128 : i32
    %7 = arith.muli %arg1, %c128_i32_1 : i32
    %8 = arith.cmpi slt, %7, %1 : i32
    %9 = arith.andi %6, %8 : i1
    %10 = arith.extui %9 : i1 to i32
    %c0_i32_2 = arith.constant 0 : i32
    %11 = arith.cmpi ne, %10, %c0_i32_2 : i32
    scf.if %11 {
      %c128_i32_8 = arith.constant 128 : i32
      %24 = arith.muli %arg0, %c128_i32_8 : i32
      %25 = tpu.iota {dimensions = array<i32: 0>} : vector<128x128xi32>
      %26 = vector.broadcast %24 : i32 to vector<128x128xi32>
      %27 = arith.addi %26, %25 : vector<128x128xi32>
      %c0_9 = arith.constant 0 : index
      %c0_10 = arith.constant 0 : index
      %28 = vector.load %arg3[%c0_9, %c0_10] : memref<1x128xi32, #tpu.memory_space<vmem>>, vector<1x128xi32>
      %29 = vector.broadcast %28 : vector<1x128xi32> to vector<128x128xi32>
      %30 = arith.cmpi eq, %29, %27 : vector<128x128xi32>
      %31 = arith.extui %30 : vector<128x128xi1> to vector<128x128xi32>
      %32 = arith.sitofp %31 : vector<128x128xi32> to vector<128x128xf32>
      %33 = arith.truncf %32 : vector<128x128xf32> to vector<128x128xbf16>
      %c0_11 = arith.constant 0 : index
      %c0_12 = arith.constant 0 : index
      %34 = vector.load %arg10[%c0_11, %c0_12] : memref<128x17xf32, #tpu.memory_space<vmem>>, vector<128x17xf32>
      %c0_13 = arith.constant 0 : index
      %c0_14 = arith.constant 0 : index
      %35 = vector.load %arg4[%c0_13, %c0_14] : memref<128x17xbf16, #tpu.memory_space<vmem>>, vector<128x17xbf16>
      %cst = arith.constant dense<0.000000e+00> : vector<128x17xf32>
      %36 = tpu.matmul %33, %35, %cst {dimension_numbers = #tpu.dot_dimension_numbers<[1], [0], [0], [1], [0, 0, 1, 1], [], []>} : vector<128x128xbf16>, vector<128x17xbf16>, vector<128x17xf32> -> vector<128x17xf32>
      %37 = arith.addf %34, %36 : vector<128x17xf32>
      %c0_15 = arith.constant 0 : index
      %c0_16 = arith.constant 0 : index
      %38 = vector.load %arg10[%c0_15, %c0_16] : memref<128x17xf32, #tpu.memory_space<vmem>>, vector<128x17xf32>
      tpu.vector_store %arg10[%c0_15, %c0_16], %37 {strides = array<i32>} : memref<128x17xf32, #tpu.memory_space<vmem>>, vector<128x17xf32>,
    } else {
    }
    %c1_i32 = arith.constant 1 : i32
    %12 = arith.cmpi eq, %arg1, %c1_i32 : i32
    %c128_i32_3 = arith.constant 128 : i32
    %13 = arith.muli %arg0, %c128_i32_3 : i32
    %14 = arith.cmpi slt, %13, %0 : i32
    %15 = arith.andi %12, %14 : i1
    %16 = arith.extui %15 : i1 to i32
    %c0_i32_4 = arith.constant 0 : i32
    %17 = arith.cmpi ne, %16, %c0_i32_4 : i32
    scf.if %17 {
      %c0_8 = arith.constant 0 : index
      %c0_9 = arith.constant 0 : index
      %24 = vector.load %arg10[%c0_8, %c0_9] : memref<128x17xf32, #tpu.memory_space<vmem>>, vector<128x17xf32>
      %25 = vector.extract_strided_slice %24 {offsets = [0, 0], sizes = [128, 16], strides = [1, 1]} : vector<128x17xf32> to vector<128x16xf32>
      %26 = vector.extract_strided_slice %24 {offsets = [0, 16], sizes = [128, 1], strides = [1, 1]} : vector<128x17xf32> to vector<128x1xf32>
      %cst = arith.constant 1.000000e+00 : f32
      %27 = vector.broadcast %cst : f32 to vector<128x1xf32>
      %28 = arith.maximumf %26, %27 : vector<128x1xf32>
      %29 = tpu.reciprocal %28 {approx = true} : vector<128x1xf32> -> vector<128x1xf32>
      %30 = vector.broadcast %29 : vector<128x1xf32> to vector<128x16xf32>
      %31 = arith.mulf %25, %30 : vector<128x16xf32>
      %c0_10 = arith.constant 0 : index
      %c0_11 = arith.constant 0 : index
      %32 = vector.load %arg5[%c0_10, %c0_11] : memref<16x16xf32, #tpu.memory_space<vmem>>, vector<16x16xf32>
      %cst_12 = arith.constant dense<0.000000e+00> : vector<128x16xf32>
      %33 = tpu.matmul %31, %32, %cst_12 {dimension_numbers = #tpu.dot_dimension_numbers<[1], [0], [0], [1], [0, 0, 1, 1], [], []>} : vector<128x16xf32>, vector<16x16xf32>, vector<128x16xf32> -> vector<128x16xf32>
      %c0_13 = arith.constant 0 : index
      %c0_14 = arith.constant 0 : index
      %34 = vector.load %arg6[%c0_13, %c0_14] : memref<1x16xf32, #tpu.memory_space<vmem>>, vector<1x16xf32>
      %35 = vector.broadcast %34 : vector<1x16xf32> to vector<128x16xf32>
      %36 = arith.addf %33, %35 : vector<128x16xf32>
      %cst_15 = arith.constant 0.000000e+00 : f32
      %37 = vector.broadcast %cst_15 : f32 to vector<128x16xf32>
      %38 = arith.maximumf %36, %37 : vector<128x16xf32>
      %c0_16 = arith.constant 0 : index
      %c0_17 = arith.constant 0 : index
      %39 = vector.load %arg7[%c0_16, %c0_17] : memref<16x16xf32, #tpu.memory_space<vmem>>, vector<16x16xf32>
      %cst_18 = arith.constant dense<0.000000e+00> : vector<128x16xf32>
      %40 = tpu.matmul %38, %39, %cst_18 {dimension_numbers = #tpu.dot_dimension_numbers<[1], [0], [0], [1], [0, 0, 1, 1], [], []>} : vector<128x16xf32>, vector<16x16xf32>, vector<128x16xf32> -> vector<128x16xf32>
      %c0_19 = arith.constant 0 : index
      %c0_20 = arith.constant 0 : index
      %41 = vector.load %arg8[%c0_19, %c0_20] : memref<1x16xf32, #tpu.memory_space<vmem>>, vector<1x16xf32>
      %42 = vector.broadcast %41 : vector<1x16xf32> to vector<128x16xf32>
      %43 = arith.addf %40, %42 : vector<128x16xf32>
      %cst_21 = arith.constant 0.000000e+00 : f32
      %44 = vector.broadcast %cst_21 : f32 to vector<128x16xf32>
      %45 = arith.maximumf %43, %44 : vector<128x16xf32>
      %c0_22 = arith.constant 0 : index
      %c0_23 = arith.constant 0 : index
      %46 = vector.load %arg9[%c0_22, %c0_23] : memref<128x16xf32, #tpu.memory_space<vmem>>, vector<128x16xf32>
      tpu.vector_store %arg9[%c0_22, %c0_23], %45 {strides = array<i32>} : memref<128x16xf32, #tpu.memory_space<vmem>>, vector<128x16xf32>,
    } else {
    }
    %c1_i32_5 = arith.constant 1 : i32
    %18 = arith.cmpi eq, %arg1, %c1_i32_5 : i32
    %c128_i32_6 = arith.constant 128 : i32
    %19 = arith.muli %arg0, %c128_i32_6 : i32
    %20 = arith.cmpi sge, %19, %0 : i32
    %21 = arith.andi %18, %20 : i1
    %22 = arith.extui %21 : i1 to i32
    %c0_i32_7 = arith.constant 0 : i32
    %23 = arith.cmpi ne, %22, %c0_i32_7 : i32
    scf.if %23 {
      %cst = arith.constant 0.000000e+00 : f32
      %24 = vector.broadcast %cst : f32 to vector<128x16xf32>
      %c0_8 = arith.constant 0 : index
      %c0_9 = arith.constant 0 : index
      %25 = vector.load %arg9[%c0_8, %c0_9] : memref<128x16xf32, #tpu.memory_space<vmem>>, vector<128x16xf32>
      tpu.vector_store %arg9[%c0_8, %c0_9], %24 {strides = array<i32>} : memref<128x16xf32, #tpu.memory_space<vmem>>, vector<128x16xf32>,
    } else {
    }
    return
  }
  func.func @transform_0(%arg0: i32, %arg1: i32, %arg2: memref<2xi32, #tpu.memory_space<smem>>) -> (i32, i32) {
    %c0_i32 = arith.constant 0 : i32
    %c0_i32_0 = arith.constant 0 : i32
    return %c0_i32, %arg1 : i32, i32
  }
  func.func @transform_1(%arg0: i32, %arg1: i32, %arg2: memref<2xi32, #tpu.memory_space<smem>>) -> (i32, i32) {
    %c0_i32 = arith.constant 0 : i32
    %c0_i32_0 = arith.constant 0 : i32
    return %arg1, %c0_i32 : i32, i32
  }
  func.func @transform_2(%arg0: i32, %arg1: i32, %arg2: memref<2xi32, #tpu.memory_space<smem>>) -> (i32, i32) {
    %c0_i32 = arith.constant 0 : i32
    %c0_i32_0 = arith.constant 0 : i32
    %c0_i32_1 = arith.constant 0 : i32
    return %c0_i32, %c0_i32_0 : i32, i32
  }
  func.func @transform_3(%arg0: i32, %arg1: i32, %arg2: memref<2xi32, #tpu.memory_space<smem>>) -> (i32, i32) {
    %c0_i32 = arith.constant 0 : i32
    %c0_i32_0 = arith.constant 0 : i32
    %c0_i32_1 = arith.constant 0 : i32
    return %c0_i32, %c0_i32_0 : i32, i32
  }
  func.func @transform_4(%arg0: i32, %arg1: i32, %arg2: memref<2xi32, #tpu.memory_space<smem>>) -> (i32, i32) {
    %c0_i32 = arith.constant 0 : i32
    %c0_i32_0 = arith.constant 0 : i32
    %c0_i32_1 = arith.constant 0 : i32
    return %c0_i32, %c0_i32_0 : i32, i32
  }
  func.func @transform_5(%arg0: i32, %arg1: i32, %arg2: memref<2xi32, #tpu.memory_space<smem>>) -> (i32, i32) {
    %c0_i32 = arith.constant 0 : i32
    %c0_i32_0 = arith.constant 0 : i32
    %c0_i32_1 = arith.constant 0 : i32
    return %c0_i32, %c0_i32_0 : i32, i32
  }
  func.func @transform_6(%arg0: i32, %arg1: i32, %arg2: memref<2xi32, #tpu.memory_space<smem>>) -> (i32, i32) {
    %c0_i32 = arith.constant 0 : i32
    %c0_i32_0 = arith.constant 0 : i32
    return %arg0, %c0_i32 : i32, i32
  }
}

</mosaic_0001>

<bundles_post_ra>
// kernel: tpu_custom_call.1
= control target key start
LH: loop header
LB: loop body
LE: loop exit
PB: predicated region body
PF: predicated region fallthrough
CT: control target
= control target key end

     0   :  { %s2146_s0 = inlined_call_operand.vmem [shape: s32[2], index: 0, kind: input, shape index: {}]   ;;  %s2147_s1 = inlined_call_operand.vmem [shape: s32[1,256], index: 1, kind: input, shape index: {}]   ;;  %s2148_s2 = inlined_call_operand.vmem [shape: bf16[256,17], index: 2, kind: input, shape index: {}]   ;;  %s2149_s3 = inlined_call_operand.vmem [shape: f32[16,16], index: 3, kind: input, shape index: {}]   ;;  %s2150_s4 = inlined_call_operand.vmem [shape: f32[1,16], index: 4, kind: input, shape index: {}]   ;;  %s2151_s5 = inlined_call_operand.vmem [shape: f32[16,16], index: 5, kind: input, shape index: {}]   ;;  %s2152_s6 = inlined_call_operand.vmem [shape: f32[1,16], index: 6, kind: input, shape index: {}]   ;;  %s2153_s7 = inlined_call_operand.vmem [shape: f32[256,16], index: 7, kind: output, shape index: {}]  }
   0x1   :  { %s12_s26 = sshll.u32 %s2146_s0, 4  ;;  %s13_s26 = int_to_ptr.vmem [resolvable:$true] %s12_s26 }
   0x2   :  { %s1667_s27 = scalar_lea.vmem %s13_s26, 16  ;;  %p1672_p1 = scmp.lt.s32.totalorder %s13_s26, %s13_s26 }
   0x3   :  { %p1668_p0 = scmp.ne.s32.totalorder %s13_s26, %s1667_s27  ;;  %p1673_p2 = scmp.lt.s32.totalorder %s1667_s27, %s1667_s27 }
   0x5   :  { %p1674_p3 = por %p1673_p2, %p1672_p1 }
   0x7   :  { %p1675_p4 = pnand %p1674_p3, %p1668_p0 }
   0x9   :  { %1678 = shalt.err (!%p1675_p4)  }
   0xa   :  { %s1721_s28 = smov [#allocation4]  }
   0xb   :  { %15 = dma.vmem_to_smem %s13_s26, 16, %s1721_s28, [#allocation3] }
   0xc   :  { %1699 = dma.done.wait [#allocation3], 16 }
   0xd   :  { %1700 = vsyncadd [#allocation3], 4294967280 }
   0xe   :  { %17 = sfence }
   0xf   :  { %s1769_s29 = smov 0   ;;  %s1771_s30 = smov 0  }
  0x10   :  { %s1773_s8 = smov 0   ;;  %s1775_s0 = smov 0  }
  0x11   :  { %s1777_s9 = smov 0  }
  0x12 LB: > { %s32_s10 = sadd.s32 1, %s1711_s8  ;;  %s35_s11 = sadd.s32 1, %s1715_s0  ;;  %s1719_s9 = sphi %s1777_s9, %s23_s9   ;;  %s1715_s0 = sphi %s1775_s0, %s2157_s0   ;;  %s1711_s8 = sphi %s1773_s8, %s2156_s8   ;;  %s1707_s30 = sphi %s1771_s30, %s2155_s30   ;;  %s1703_s29 = sphi %s1769_s29, %s2154_s29  }
  0x13   : > { %p33_p5 = scmp.ge.s32.totalorder %s32_s10, 2  ;;  %p1330_p6 = scmp.ge.s32.totalorder %s1719_s9, 1 }
  0x14   : > { %p240_p7 = scmp.lt.s32.totalorder %s1719_s9, 5 }
  0x15   : > { %s2159_s10 = smov (%p33_p5, %s32_s10), 0  ;;  %s2161_s11 = smov (!%p33_p5, %s35_s11), %s1715_s0 }
  0x16   : > { %p241_p8 = pnand %p1330_p6, %p240_p7  ;;  %p37_p9 = scmp.ge.s32.totalorder %s2161_s11, 2 }
  0x17   : > { %p273_p10 = scmp.lt.s32.totalorder (!%p241_p8), %s1703_s29, 1  ;;  %s1331_s12 = sshll.u32 (!%p241_p8), %s1703_s29, 4 }
  0x18   : > { %s2163_s11 = smov (%p37_p9, %s2161_s11), 0  ;;  %244 = sbr.rel (%p241_p8) target bundleno = 933 (0x3a5), region = 44 }
  0x19   : > { %p277_p11 = scmp.lt.s32.totalorder (!%p241_p8), %s1331_s12, 31  ;;  %s1333_s13 = sshll.u32 (!%p241_p8), %s1707_s30, 4 }
  0x1a   : > { %p283_p12 = scmp.lt.s32.totalorder (!%p241_p8), %s1333_s13, 31  ;;  %s1813_s19 = sld [smem:[#allocation4]] (!%p241_p8) }
  0x1b   : > { %s1335_s23 = sld [smem:[#allocation4 + $0x1]] (!%p241_p8)  ;;  %p1336_p13 = scmp.ne.s32.totalorder (!%p241_p8), %s1703_s29, 0 }
  0x1f   : > { %s1807_s14 = scalar_select %p273_p10, %s1703_s29, 1 }
  0x20   : > { %s2165_s12 = smov (!%p277_p11, %s1331_s12), 31  ;;  %s2167_s13 = smov (!%p283_p12, %s1333_s13), 31 }
  0x21   : > { %s275_s17 = scalar_lea.vmem %s2147_s1, %s1807_s14  ;;  %s1332_s18 = sshll.u32 %s2165_s12, 2  ;;  %vm295_vm0 = vcmask (!%p1336_p13), 138240   ;;  %v1722_v0 = vmov (!%p1336_p13), 0.0  }
  0x22   : > { %s1818_s22 = scalar_lea.vmem %s2148_s2, %s1332_s18  ;;  %s1334_s24 = sshll.u32 %s2167_s13, 3  ;;  %296 = vst.msk [vmem:[#allocation2] sm:$0xff] (!%p1336_p13), %vm295_vm0, %v1722_v0  ;;  %297 = vst.msk [vmem:[#allocation2 + $0x8] sm:$0xff] (!%p1336_p13), %vm295_vm0, %v1722_v0 }
  0x23   : > { %s1823_s27 = scalar_lea.vmem %s2153_s7, %s1334_s24  ;;  %294 = sbr.rel (%p1336_p13) target bundleno = 42 (0x2a), region = 48  ;;  %298 = vst.msk [vmem:[#allocation2 + $0x10] sm:$0xff] (!%p1336_p13), %vm295_vm0, %v1722_v0  ;;  %299 = vst.msk [vmem:[#allocation2 + $0x18] sm:$0xff] (!%p1336_p13), %vm295_vm0, %v1722_v0 }
  0x24   : > { %300 = vst.msk [vmem:[#allocation2 + $0x20] sm:$0xff] (!%p1336_p13), %vm295_vm0, %v1722_v0  ;;  %301 = vst.msk [vmem:[#allocation2 + $0x28] sm:$0xff] (!%p1336_p13), %vm295_vm0, %v1722_v0 }
  0x25   : > { %302 = vst.msk [vmem:[#allocation2 + $0x30] sm:$0xff] (!%p1336_p13), %vm295_vm0, %v1722_v0  ;;  %303 = vst.msk [vmem:[#allocation2 + $0x38] sm:$0xff] (!%p1336_p13), %vm295_vm0, %v1722_v0 }
  0x26   : > { %304 = vst.msk [vmem:[#allocation2 + $0x40] sm:$0xff] (!%p1336_p13), %vm295_vm0, %v1722_v0  ;;  %305 = vst.msk [vmem:[#allocation2 + $0x48] sm:$0xff] (!%p1336_p13), %vm295_vm0, %v1722_v0 }
  0x27   : > { %306 = vst.msk [vmem:[#allocation2 + $0x50] sm:$0xff] (!%p1336_p13), %vm295_vm0, %v1722_v0  ;;  %307 = vst.msk [vmem:[#allocation2 + $0x58] sm:$0xff] (!%p1336_p13), %vm295_vm0, %v1722_v0 }
  0x28   : > { %308 = vst.msk [vmem:[#allocation2 + $0x60] sm:$0xff] (!%p1336_p13), %vm295_vm0, %v1722_v0  ;;  %309 = vst.msk [vmem:[#allocation2 + $0x68] sm:$0xff] (!%p1336_p13), %vm295_vm0, %v1722_v0 }
  0x29   : > { %310 = vst.msk [vmem:[#allocation2 + $0x70] sm:$0xff] (!%p1336_p13), %vm295_vm0, %v1722_v0  ;;  %311 = vst.msk [vmem:[#allocation2 + $0x78] sm:$0xff] (!%p1336_p13), %vm295_vm0, %v1722_v0 }
  0x2a PF: > { %s1843_s28 = sshll.u32 %s1707_s30, 7  ;;  %s1338_s12 = sshll.u32 %s1703_s29, 7 }
  0x2b   : > { %p313_p0 = scmp.lt.s32.totalorder %s1843_s28, %s1813_s19  ;;  %p315_p1 = scmp.lt.s32.totalorder %s1338_s12, %s1335_s23 }
  0x2d   : > { %p316_p2 = pnand %p315_p1, %p313_p0 }
  0x2e   : > { %v1625_v1 = vld [vmem:[%s1818_s22] sm:$0xff] (!%p316_p2)   ;;  %v320_v2 = vlaneseq (!%p316_p2)  ;;  %v1626_v3 = vld [vmem:[%s1818_s22 + $0x8] sm:$0xff] (!%p316_p2)   ;;  %v1856_v5 = vstv (!%p316_p2), %s1843_s28  ;;  %v1627_v6 = vld [vmem:[%s1818_s22 + $0x10] sm:$0xff] (!%p316_p2)   ;;  %v1723_v17 = vmov (!%p316_p2), 1.0|1.0  }
  0x2f   : > { %319 = sbr.rel (%p316_p2) target bundleno = 305 (0x131), region = 52  ;;  %1468 = vmatprep.subr.bf16.mxu0 (!%p316_p2), %v1625_v1  ;;  %1564 = vmatprep.subr.bf16.mxu1 (!%p316_p2), %v1625_v1  ;;  %v1628_v13 = vld [vmem:[%s1818_s22 + $0x18] sm:$0xff] (!%p316_p2)   ;;  %v1872_v14 = vld [vmem:[%s275_s17] ss:$0 sm:$0xff] (!%p316_p2)  ;;  %v1630_v18 = vld [vmem:[%s1818_s22 + $0x28] sm:$0xff] (!%p316_p2)  }
  0x30   : > { %v1853_v4 = vshrl.u32 (!%p316_p2), %v320_v2, 7  ;;  %1469 = vmatpush3.bf16.msra.mxu0 (!%p316_p2), %v1625_v1  ;;  %1572 = vmatpush3.bf16.msra.mxu1 (!%p316_p2), %v1625_v1  ;;  %v1629_v16 = vld [vmem:[%s1818_s22 + $0x20] sm:$0xff] (!%p316_p2)   ;;  %v1631_v23 = vld [vmem:[%s1818_s22 + $0x30] sm:$0xff] (!%p316_p2)   ;;  %v1632_v32 = vld [vmem:[%s1818_s22 + $0x38] sm:$0xff] (!%p316_p2)  }
  0x31   : > { %1470 = vmatprep.subr.bf16.mxu0 (!%p316_p2), %v1626_v3  ;;  %1565 = vmatprep.subr.bf16.mxu1 (!%p316_p2), %v1626_v3  ;;  %v417_v45 = vld [vmem:[#allocation2 + $0x10] sm:$0xff] (!%p316_p2)  ;;  %v415_v47 = vld [vmem:[#allocation2] sm:$0xff] (!%p316_p2)  ;;  %v418_v51 = vld [vmem:[#allocation2 + $0x18] sm:$0xff] (!%p316_p2) }
  0x32   : > { %v322_v7 = vadd.s32 (!%p316_p2), 8, %v1853_v4  ;;  %v338_v8 = vadd.s32 (!%p316_p2), %v1856_v5, %v1853_v4  ;;  %v329_v9 = vadd.s32 (!%p316_p2), 64, %v1853_v4  ;;  %v330_v11 = vadd.s32 (!%p316_p2), 72, %v1853_v4  ;;  %v425_v46 = vld [vmem:[#allocation2 + $0x50] sm:$0xff] (!%p316_p2)  ;;  %v423_v48 = vld [vmem:[#allocation2 + $0x40] sm:$0xff] (!%p316_p2)  ;;  %v426_v52 = vld [vmem:[#allocation2 + $0x58] sm:$0xff] (!%p316_p2) }
  0x33   : > { %v323_v19 = vadd.s32 (!%p316_p2), 16, %v1853_v4  ;;  %v324_v20 = vadd.s32 (!%p316_p2), 24, %v1853_v4  ;;  %v331_v21 = vadd.s32 (!%p316_p2), 80, %v1853_v4  ;;  %v332_v22 = vadd.s32 (!%p316_p2), 88, %v1853_v4  ;;  %v416_v57 = vld [vmem:[#allocation2 + $0x8] sm:$0xff] (!%p316_p2) }
  0x34   : > { %v339_v10 = vadd.s32 (!%p316_p2), %v1856_v5, %v322_v7  ;;  %1471 = vmatpush3.bf16.msra.mxu0 (!%p316_p2), %v1626_v3  ;;  %1573 = vmatpush3.bf16.msra.mxu1 (!%p316_p2), %v1626_v3  ;;  %v346_v12 = vadd.s32 (!%p316_p2), %v1856_v5, %v329_v9  ;;  %v347_v15 = vadd.s32 (!%p316_p2), %v1856_v5, %v330_v11  ;;  %v325_v24 = vadd.s32 (!%p316_p2), 32, %v1853_v4  ;;  %v424_v58 = vld [vmem:[#allocation2 + $0x48] sm:$0xff] (!%p316_p2)  ;;  %v419_v7 = vld [vmem:[#allocation2 + $0x20] sm:$0xff] (!%p316_p2)  ;;  %v422_v11 = vld [vmem:[#allocation2 + $0x38] sm:$0xff] (!%p316_p2) }
  0x35   : > { %1472 = vmatprep.subr.bf16.mxu0 (!%p316_p2), %v1627_v6  ;;  %1566 = vmatprep.subr.bf16.mxu1 (!%p316_p2), %v1627_v6  ;;  %vm359_vm1 = vcmp.eq.s32.totalorder (!%p316_p2), %v1872_v14, %v338_v8  ;;  %v326_v25 = vadd.s32 (!%p316_p2), 40, %v1853_v4  ;;  %v333_v26 = vadd.s32 (!%p316_p2), 96, %v1853_v4  ;;  %v334_v27 = vadd.s32 (!%p316_p2), 104, %v1853_v4  ;;  %v427_v8 = vld [vmem:[#allocation2 + $0x60] sm:$0xff] (!%p316_p2) }
  0x36   : > { %vm360_vm2 = vcmp.eq.s32.totalorder %v1872_v14, %v339_v10  ;;  %vm367_vm3 = vcmp.eq.s32.totalorder %v1872_v14, %v346_v12  ;;  %vm368_vm5 = vcmp.eq.s32.totalorder %v1872_v14, %v347_v15  ;;  %v340_v28 = vadd.s32 %v1856_v5, %v323_v19  ;;  %v430_v12 = vld [vmem:[#allocation2 + $0x78] sm:$0xff] }
  0x37   : > { %vm1364_vm4 = vmpackc.low %vm360_vm2, %vm359_vm1  ;;  %v341_v29 = vadd.s32 %v1856_v5, %v324_v20  ;;  %v348_v30 = vadd.s32 %v1856_v5, %v331_v21  ;;  %v349_v31 = vadd.s32 %v1856_v5, %v332_v22  ;;  %v342_v33 = vadd.s32 %v1856_v5, %v325_v24 }
  0x38   : > { %1473 = vmatpush3.bf16.msra.mxu0 %v1627_v6  ;;  %1574 = vmatpush3.bf16.msra.mxu1 %v1627_v6  ;;  %vm1372_vm6 = vmpackc.low %vm368_vm5, %vm367_vm3  ;;  %v343_v34 = vadd.s32 %v1856_v5, %v326_v25  ;;  %v350_v35 = vadd.s32 %v1856_v5, %v333_v26  ;;  %v351_v36 = vadd.s32 %v1856_v5, %v334_v27  ;;  %v327_v37 = vadd.s32 48, %v1853_v4  ;;  %v429_v6 = vld [vmem:[#allocation2 + $0x70] sm:$0xff] }
  0x39   : > { %1474 = vmatprep.subr.bf16.mxu0 %v1628_v13  ;;  %1567 = vmatprep.subr.bf16.mxu1 %v1628_v13  ;;  %vm361_vm7 = vcmp.eq.s32.totalorder %v1872_v14, %v340_v28  ;;  %vm362_vm8 = vcmp.eq.s32.totalorder %v1872_v14, %v341_v29  ;;  %vm369_vm9 = vcmp.eq.s32.totalorder %v1872_v14, %v348_v30  ;;  %v328_v38 = vadd.s32 56, %v1853_v4 }
  0x3a   : > { %1484 = vmatprep.mubr.msk.bf16.mxu0 %vm1364_vm4, %v1723_v17  ;;  %1492 = vmatprep.mubr.msk.bf16.mxu1 %vm1372_vm6, %v1723_v17  ;;  %vm370_vm10 = vcmp.eq.s32.totalorder %v1872_v14, %v349_v31  ;;  %vm363_vm11 = vcmp.eq.s32.totalorder %v1872_v14, %v342_v33  ;;  %vm364_vm12 = vcmp.eq.s32.totalorder %v1872_v14, %v343_v34  ;;  %v335_v39 = vadd.s32 112, %v1853_v4  ;;  %vm1366_vm13 = vmpackc.low %vm362_vm8, %vm361_vm7 }
  0x3b   : > { %v336_v40 = vadd.s32 120, %v1853_v4  ;;  %vm371_vm14 = vcmp.eq.s32.totalorder %v1872_v14, %v350_v35  ;;  %vm372_vm15 = vcmp.eq.s32.totalorder %v1872_v14, %v351_v36  ;;  %vm1374_vm0 = vmpackc.low %vm370_vm10, %vm369_vm9  ;;  %v344_v41 = vadd.s32 %v1856_v5, %v327_v37 }
  0x3c   : > { %1475 = vmatpush3.bf16.msra.mxu0 %v1628_v13  ;;  %1575 = vmatpush3.bf16.msra.mxu1 %v1628_v13  ;;  %vm1368_vm1 = vmpackc.low %vm364_vm12, %vm363_vm11  ;;  %v345_v42 = vadd.s32 %v1856_v5, %v328_v38  ;;  %v352_v43 = vadd.s32 %v1856_v5, %v335_v39  ;;  %vm608_vm9 = vcmask 138240  }
  0x3d   : > { %1476 = vmatprep.subr.bf16.mxu0 %v1629_v16  ;;  %1568 = vmatprep.subr.bf16.mxu1 %v1629_v16  ;;  %vm1376_vm2 = vmpackc.low %vm372_vm15, %vm371_vm14  ;;  %v353_v44 = vadd.s32 %v1856_v5, %v336_v40  ;;  %vm365_vm3 = vcmp.eq.s32.totalorder %v1872_v14, %v344_v41  ;;  %v421_v5 = vld [vmem:[#allocation2 + $0x30] sm:$0xff] }
  0x3e   : > { %vm366_vm4 = vcmp.eq.s32.totalorder %v1872_v14, %v345_v42  ;;  %vm373_vm5 = vcmp.eq.s32.totalorder %v1872_v14, %v352_v43 }
  0x3f   : > { %vm374_vm6 = vcmp.eq.s32.totalorder %v1872_v14, %v353_v44  ;;  %vm1370_vm7 = vmpackc.low %vm366_vm4, %vm365_vm3 }
  0x40   : > { %1477 = vmatpush3.bf16.msra.mxu0 %v1629_v16  ;;  %1576 = vmatpush3.bf16.msra.mxu1 %v1629_v16  ;;  %vm1378_vm8 = vmpackc.low %vm374_vm6, %vm373_vm5 }
  0x41   : > { %1478 = vmatprep.subr.bf16.mxu0 %v1630_v18  ;;  %1569 = vmatprep.subr.bf16.mxu1 %v1630_v18 }
  0x44   : > { %1479 = vmatpush3.bf16.msra.mxu0 %v1630_v18  ;;  %1577 = vmatpush3.bf16.msra.mxu1 %v1630_v18  ;;  %v428_v18 = vld [vmem:[#allocation2 + $0x68] sm:$0xff] }
  0x45   : > { %1480 = vmatprep.subr.bf16.mxu0 %v1631_v23  ;;  %1570 = vmatprep.subr.bf16.mxu1 %v1631_v23 }
  0x48   : > { %1481 = vmatpush3.bf16.msra.mxu0 %v1631_v23  ;;  %1578 = vmatpush3.bf16.msra.mxu1 %v1631_v23 }
  0x49   : > { %1482 = vmatprep.subr.bf16.mxu0 %v1632_v32  ;;  %1571 = vmatprep.subr.bf16.mxu1 %v1632_v32 }
  0x4c   : > { %1483 = vmatpush3.bf16.msra.mxu0 %v1632_v32  ;;  %1579 = vmatpush3.bf16.msra.mxu1 %v1632_v32 }
  0x4f   : > { %1485 = vmatmul.mubr.msk.bf16.vlgmr.msra.gmra.mrb[0].mxu0 %vm1366_vm13, %v1723_v17  ;;  %1493 = vmatmul.mubr.msk.bf16.vlgmr.msra.gmra.mrb[0].mxu1 %vm1374_vm0, %v1723_v17 }
  0x50   : > { %1488 = vmatprep.mubr.msk.bf16.mxu0 %vm1368_vm1, %v1723_v17  ;;  %1496 = vmatprep.mubr.msk.bf16.mxu1 %vm1376_vm2, %v1723_v17 }
  0x57   : > { %1489 = vmatmul.mubr.msk.bf16.gmra.mrb[4].mxu0 %vm1370_vm7, %v1723_v17  ;;  %1497 = vmatmul.mubr.msk.bf16.gmra.mrb[4].mxu1 %vm1378_vm8, %v1723_v17  ;;  %v420_v17 = vld [vmem:[#allocation2 + $0x28] sm:$0xff] }
 0x122   : > { %v1486_v49 = vpop.f32.mrb[0].mxu0  ;;  %v1494_v50 = vpop.f32.mrb[0].mxu1 }
 0x123   : > { %v594_v53 = vadd.f32 %v1486_v49, %v417_v45  ;;  %v602_v54 = vadd.f32 %v1494_v50, %v425_v46  ;;  %v529_v55 = vpop.f32.mrb[1].mxu0  ;;  %v561_v56 = vpop.f32.mrb[1].mxu1 }
 0x124   : > { %v592_v59 = vadd.f32 %v529_v55, %v415_v47  ;;  %v600_v60 = vadd.f32 %v561_v56, %v423_v48  ;;  %v1487_v61 = vpop.f32.mrb[2].mxu0  ;;  %v1495_v62 = vpop.f32.mrb[2].mxu1 }
 0x125   : > { %611 = vst.msk [vmem:[#allocation2 + $0x10] sm:$0xff] %vm608_vm9, %v594_v53  ;;  %619 = vst.msk [vmem:[#allocation2 + $0x50] sm:$0xff] %vm608_vm9, %v602_v54  ;;  %v595_v63 = vadd.f32 %v1487_v61, %v418_v51  ;;  %v603_v0 = vadd.f32 %v1495_v62, %v426_v52  ;;  %v532_v1 = vpop.f32.mrb[3].mxu0  ;;  %v564_v2 = vpop.f32.mrb[3].mxu1 }
 0x126   : > { %609 = vst.msk [vmem:[#allocation2] sm:$0xff] %vm608_vm9, %v592_v59  ;;  %617 = vst.msk [vmem:[#allocation2 + $0x40] sm:$0xff] %vm608_vm9, %v600_v60  ;;  %v593_v3 = vadd.f32 %v532_v1, %v416_v57  ;;  %v601_v4 = vadd.f32 %v564_v2, %v424_v58 }
 0x127   : > { %612 = vst.msk [vmem:[#allocation2 + $0x18] sm:$0xff] %vm608_vm9, %v595_v63  ;;  %620 = vst.msk [vmem:[#allocation2 + $0x58] sm:$0xff] %vm608_vm9, %v603_v0 }
 0x128   : > { %610 = vst.msk [vmem:[#allocation2 + $0x8] sm:$0xff] %vm608_vm9, %v593_v3  ;;  %618 = vst.msk [vmem:[#allocation2 + $0x48] sm:$0xff] %vm608_vm9, %v601_v4 }
 0x12a   : > { %v1490_v9 = vpop.f32.mrb[4].mxu0  ;;  %v1498_v10 = vpop.f32.mrb[4].mxu1 }
 0x12b   : > { %v598_v13 = vadd.f32 %v1490_v9, %v421_v5  ;;  %v606_v14 = vadd.f32 %v1498_v10, %v429_v6  ;;  %v545_v15 = vpop.f32.mrb[5].mxu0  ;;  %v577_v16 = vpop.f32.mrb[5].mxu1 }
 0x12c   : > { %v596_v19 = vadd.f32 %v545_v15, %v419_v7  ;;  %v604_v20 = vadd.f32 %v577_v16, %v427_v8  ;;  %v1491_v21 = vpop.f32.mrb[6].mxu0  ;;  %v1499_v22 = vpop.f32.mrb[6].mxu1 }
 0x12d   : > { %615 = vst.msk [vmem:[#allocation2 + $0x30] sm:$0xff] %vm608_vm9, %v598_v13  ;;  %623 = vst.msk [vmem:[#allocation2 + $0x70] sm:$0xff] %vm608_vm9, %v606_v14  ;;  %v599_v23 = vadd.f32 %v1491_v21, %v422_v11  ;;  %v607_v24 = vadd.f32 %v1499_v22, %v430_v12  ;;  %v548_v25 = vpop.f32.mrb[7].mxu0  ;;  %v580_v26 = vpop.f32.mrb[7].mxu1 }
 0x12e   : > { %613 = vst.msk [vmem:[#allocation2 + $0x20] sm:$0xff] %vm608_vm9, %v596_v19  ;;  %621 = vst.msk [vmem:[#allocation2 + $0x60] sm:$0xff] %vm608_vm9, %v604_v20  ;;  %v597_v27 = vadd.f32 %v548_v25, %v420_v17  ;;  %v605_v28 = vadd.f32 %v580_v26, %v428_v18 }
 0x12f   : > { %616 = vst.msk [vmem:[#allocation2 + $0x38] sm:$0xff] %vm608_vm9, %v599_v23  ;;  %624 = vst.msk [vmem:[#allocation2 + $0x78] sm:$0xff] %vm608_vm9, %v607_v24 }
 0x130   : > { %614 = vst.msk [vmem:[#allocation2 + $0x28] sm:$0xff] %vm608_vm9, %v597_v27  ;;  %622 = vst.msk [vmem:[#allocation2 + $0x68] sm:$0xff] %vm608_vm9, %v605_v28 }
 0x131 PF: > { %p625_p3 = scmp.eq.s32.totalorder %s1703_s29, 1 }
 0x133   : > { %p626_p4 = pnand %p625_p3, %p313_p0 }
 0x134   : > { %v1949_v29 = vld [vmem:[#allocation2 + $0x10] sm:$0xff] (!%p626_p4)  ;;  %v1951_v30 = vld [vmem:[#allocation2] sm:$0xff] (!%p626_p4)  ;;  %v1953_v31 = vld [vmem:[#allocation2 + $0x18] sm:$0xff] (!%p626_p4)  ;;  %v1724_v32 = vmov (!%p626_p4), 16   ;;  %vm783_vm10 = vcmask (!%p626_p4), 130048  }
 0x135   : > { %629 = sbr.rel (%p626_p4) target bundleno = 921 (0x399), region = 56  ;;  %1634 = vset.pattern.permute.xlu1 (!%p626_p4), %v1724_v32  ;;  %1633 = vset.pattern.permute.xlu0 (!%p626_p4), %v1724_v32  ;;  %v648_v33 = vmax.f32 (!%p626_p4), %v1949_v29, 1.0  ;;  %v646_v34 = vmax.f32 (!%p626_p4), %v1951_v30, 1.0  ;;  %v649_v35 = vmax.f32 (!%p626_p4), %v1953_v31, 1.0  ;;  %v1958_v36 = vld [vmem:[#allocation2 + $0x8] sm:$0xff] (!%p626_p4)  ;;  %v1963_v39 = vld [vmem:[#allocation2 + $0x20] sm:$0xff] (!%p626_p4) }
 0x136   : > { %v647_v37 = vmax.f32 (!%p626_p4), %v1958_v36, 1.0  ;;  %v650_v41 = vmax.f32 (!%p626_p4), %v1963_v39, 1.0  ;;  %v1967_v42 = vld [vmem:[#allocation2 + $0x38] sm:$0xff] (!%p626_p4)  ;;  %v1969_v43 = vld [vmem:[#allocation2 + $0x30] sm:$0xff] (!%p626_p4)  ;;  %v1973_v46 = vld [vmem:[#allocation2 + $0x48] sm:$0xff] (!%p626_p4) }
 0x137   : > { %v1961_v38 = vld [vmem:[#allocation2 + $0x28] sm:$0xff] (!%p626_p4)  ;;  %1635 = vrcp.f32 (!%p626_p4), %v648_v33  ;;  %v653_v44 = vmax.f32 (!%p626_p4), %v1967_v42, 1.0  ;;  %v652_v45 = vmax.f32 (!%p626_p4), %v1969_v43, 1.0  ;;  %v1975_v47 = vld [vmem:[#allocation2 + $0x40] sm:$0xff] (!%p626_p4)  ;;  %v655_v49 = vmax.f32 (!%p626_p4), %v1973_v46, 1.0  ;;  %v1979_v52 = vld [vmem:[#allocation2 + $0x58] sm:$0xff] (!%p626_p4) }
 0x138   : > { %1637 = vrcp.f32 (!%p626_p4), %v646_v34  ;;  %v651_v40 = vmax.f32 (!%p626_p4), %v1961_v38, 1.0  ;;  %v654_v51 = vmax.f32 (!%p626_p4), %v1975_v47, 1.0  ;;  %v774_v53 = vld [vmem:[%s2149_s3] sm:$0xff] (!%p626_p4)  ;;  %v775_v54 = vld [vmem:[%s2149_s3 + $0x8] sm:$0xff] (!%p626_p4)  ;;  %v1987_v56 = vld [vmem:[#allocation2 + $0x50] sm:$0xff] (!%p626_p4)  ;;  %v657_v59 = vmax.f32 (!%p626_p4), %v1979_v52, 1.0 }
 0x139   : > { %1639 = vrcp.f32 (!%p626_p4), %v649_v35  ;;  %v1556_v57 = vpack.c.bf16 (!%p626_p4), %v775_v54, %v774_v53  ;;  %v656_v60 = vmax.f32 (!%p626_p4), %v1987_v56, 1.0  ;;  %v1991_v61 = vld [vmem:[#allocation2 + $0x68] sm:$0xff] (!%p626_p4)  ;;  %v1993_v63 = vld [vmem:[#allocation2 + $0x60] sm:$0xff] (!%p626_p4)  ;;  %v1997_v3 = vld [vmem:[#allocation2 + $0x78] sm:$0xff] (!%p626_p4) }
 0x13a   : > { %1641 = vrcp.f32 (!%p626_p4), %v647_v37  ;;  %v659_v1 = vmax.f32 (!%p626_p4), %v1991_v61, 1.0  ;;  %v658_v2 = vmax.f32 (!%p626_p4), %v1993_v63, 1.0  ;;  %v1999_v5 = vld [vmem:[#allocation2 + $0x70] sm:$0xff] (!%p626_p4)  ;;  %v661_v7 = vmax.f32 (!%p626_p4), %v1997_v3, 1.0 }
 0x13b   : > { %1643 = vrcp.f32 (!%p626_p4), %v651_v40  ;;  %1557 = vmatprep.subr.bf16.mxu0 (!%p626_p4), %v1556_v57  ;;  %v660_v8 = vmax.f32 (!%p626_p4), %v1999_v5, 1.0 }
 0x13c   : > { %1645 = vrcp.f32 %v650_v41  ;;  %1559 = vmatpush3.bf16.msra.mxu0 %v1556_v57 }
 0x13d   : > { %1647 = vrcp.f32 %v653_v44 }
 0x13e   : > { %1649 = vrcp.f32 %v652_v45 }
 0x13f   : > { %1651 = vrcp.f32 %v655_v49  ;;  %v993_v49 = vld [vmem:[%s2151_s5] sm:$0xff] }
 0x140   : > { %1653 = vrcp.f32 %v654_v51 }
 0x141   : > { %v1636_v48 = vpop.eup %1635  ;;  %1655 = vrcp.f32 %v657_v59 }
 0x142   : > { %v1638_v50 = vpop.eup %1637  ;;  %690 = vperm.xlu1 %1634, %v1636_v48   ;;  %1657 = vrcp.f32 %v656_v60 }
 0x143   : > { %v1640_v55 = vpop.eup %1639  ;;  %680 = vperm.xlu0 %1633, %v1638_v50   ;;  %1659 = vrcp.f32 %v659_v1  ;;  %v994_v50 = vld [vmem:[%s2151_s5 + $0x8] sm:$0xff] }
 0x144   : > { %v1642_v58 = vpop.eup %1641  ;;  %1661 = vrcp.f32 %v658_v2  ;;  %v1560_v51 = vpack.c.bf16 %v994_v50, %v993_v49 }
 0x145   : > { %v1644_v62 = vpop.eup %1643  ;;  %1663 = vrcp.f32 %v661_v7 }
 0x146   : > { %695 = vperm.xlu1 %1634, %v1640_v55   ;;  %v1646_v0 = vpop.eup %1645  ;;  %1665 = vrcp.f32 %v660_v8  ;;  %1561 = vmatprep.subr.bf16.mxu1 %v1560_v51 }
 0x147   : > { %685 = vperm.xlu0 %1633, %v1642_v58   ;;  %v1648_v4 = vpop.eup %1647  ;;  %1563 = vmatpush3.bf16.msra.mxu1 %v1560_v51 }
 0x148   : > { %v1650_v6 = vpop.eup %1649 }
 0x149   : > { %v1652_v9 = vpop.eup %1651 }
 0x14a   : > { %705 = vperm.xlu1 %1634, %v1644_v62   ;;  %v1654_v10 = vpop.eup %1653 }
 0x14b   : > { %700 = vperm.xlu0 %1633, %v1646_v0   ;;  %v1656_v11 = vpop.eup %1655 }
 0x14c   : > { %v1658_v12 = vpop.eup %1657 }
 0x14d   : > { %v1660_v13 = vpop.eup %1659 }
 0x14e   : > { %715 = vperm.xlu1 %1634, %v1648_v4   ;;  %v1662_v14 = vpop.eup %1661 }
 0x14f   : > { %710 = vperm.xlu0 %1633, %v1650_v6   ;;  %v1664_v15 = vpop.eup %1663 }
 0x150   : > { %v1666_v16 = vpop.eup %1665 }
 0x152   : > { %725 = vperm.xlu1 %1634, %v1652_v9  }
 0x153   : > { %720 = vperm.xlu0 %1633, %v1654_v10  }
 0x156   : > { %735 = vperm.xlu1 %1634, %v1656_v11  }
 0x157   : > { %730 = vperm.xlu0 %1633, %v1658_v12  }
 0x15a   : > { %745 = vperm.xlu1 %1634, %v1660_v13  }
 0x15b   : > { %740 = vperm.xlu0 %1633, %v1662_v14  }
 0x15e   : > { %755 = vperm.xlu1 %1634, %v1664_v15  }
 0x15f   : > { %750 = vperm.xlu0 %1633, %v1666_v16  }
 0x1c1   : > { %v691_v17 = vpop.permute.xlu1 %690 }
 0x1c2   : > { %v681_v18 = vpop.permute.xlu0 %680  ;;  %v760_v21 = vmul.f32 %v691_v17, %v1949_v29 }
 0x1c3   : > { %v758_v19 = vmul.f32 %v681_v18, %v1951_v30 }
 0x1c5   : > { %1504 = vmatprep.mubr.msk.f32.mxu0 %vm783_vm10, %v758_v19  ;;  %v696_v20 = vpop.permute.xlu1 %695 }
 0x1c6   : > { %v686_v22 = vpop.permute.xlu0 %685  ;;  %v761_v26 = vmul.f32 %v696_v20, %v1953_v31 }
 0x1c7   : > { %v759_v23 = vmul.f32 %v686_v22, %v1958_v36 }
 0x1c9   : > { %1505 = vmatmul.mubr.msk.f32.vlgmr.msra.gmra.mrb[0].mxu0 %vm783_vm10, %v759_v23  ;;  %v706_v24 = vpop.permute.xlu1 %705 }
 0x1ca   : > { %1507 = vmatprep.mubr.msk.f32.mxu0 %vm783_vm10, %v760_v21  ;;  %v701_v25 = vpop.permute.xlu0 %700  ;;  %v763_v29 = vmul.f32 %v706_v24, %v1961_v38 }
 0x1cb   : > { %v762_v27 = vmul.f32 %v701_v25, %v1963_v39 }
 0x1cd   : > { %1508 = vmatmul.mubr.msk.f32.gmra.mrb[2].mxu0 %vm783_vm10, %v761_v26  ;;  %v716_v28 = vpop.permute.xlu1 %715 }
 0x1ce   : > { %1510 = vmatprep.mubr.msk.f32.mxu0 %vm783_vm10, %v762_v27  ;;  %v711_v30 = vpop.permute.xlu0 %710  ;;  %v765_v31 = vmul.f32 %v716_v28, %v1967_v42 }
 0x1cf   : > { %v764_v32 = vmul.f32 %v711_v30, %v1969_v43 }
 0x1d1   : > { %1511 = vmatmul.mubr.msk.f32.gmra.mrb[4].mxu0 %vm783_vm10, %v763_v29  ;;  %v726_v33 = vpop.permute.xlu1 %725 }
 0x1d2   : > { %1513 = vmatprep.mubr.msk.f32.mxu0 %vm783_vm10, %v764_v32  ;;  %v721_v34 = vpop.permute.xlu0 %720  ;;  %v767_v38 = vmul.f32 %v726_v33, %v1973_v46 }
 0x1d3   : > { %v766_v35 = vmul.f32 %v721_v34, %v1975_v47 }
 0x1d5   : > { %1514 = vmatmul.mubr.msk.f32.gmra.mrb[6].mxu0 %vm783_vm10, %v765_v31  ;;  %v736_v36 = vpop.permute.xlu1 %735 }
 0x1d6   : > { %1516 = vmatprep.mubr.msk.f32.mxu0 %vm783_vm10, %v766_v35  ;;  %v731_v37 = vpop.permute.xlu0 %730  ;;  %v769_v42 = vmul.f32 %v736_v36, %v1979_v52  ;;  %v1380_v52 = vld [vmem:[%s2150_s4] ss:$0 sm:$0xff] }
 0x1d7   : > { %v768_v39 = vmul.f32 %v731_v37, %v1987_v56  ;;  %v1397_v37 = vld [vmem:[%s2152_s6] ss:$0 sm:$0xff] }
 0x1d9   : > { %1517 = vmatmul.mubr.msk.f32.gmra.mrb[8].mxu0 %vm783_vm10, %v767_v38  ;;  %v746_v40 = vpop.permute.xlu1 %745 }
 0x1da   : > { %1519 = vmatprep.mubr.msk.f32.mxu0 %vm783_vm10, %v768_v39  ;;  %v741_v41 = vpop.permute.xlu0 %740  ;;  %v771_v45 = vmul.f32 %v746_v40, %v1991_v61 }
 0x1db   : > { %v770_v43 = vmul.f32 %v741_v41, %v1993_v63 }
 0x1dd   : > { %1520 = vmatmul.mubr.msk.f32.gmra.mrb[10].mxu0 %vm783_vm10, %v769_v42  ;;  %v756_v47 = vpop.permute.xlu1 %755 }
 0x1de   : > { %1522 = vmatprep.mubr.msk.f32.mxu0 %vm783_vm10, %v770_v43  ;;  %v751_v44 = vpop.permute.xlu0 %750  ;;  %v773_v48 = vmul.f32 %v756_v47, %v1997_v3 }
 0x1df   : > { %v772_v46 = vmul.f32 %v751_v44, %v1999_v5 }
 0x1e1   : > { %1523 = vmatmul.mubr.msk.f32.gmra.mrb[12].mxu0 %vm783_vm10, %v771_v45 }
 0x1e2   : > { %1525 = vmatprep.mubr.msk.f32.mxu0 %vm783_vm10, %v772_v46 }
 0x1e5   : > { %1526 = vmatmul.mubr.msk.f32.gmra.mrb[14].mxu0 %vm783_vm10, %v773_v48 }
 0x29c   : > { %v1506_v53 = vpop.f32.mrb[0].mxu0 }
 0x29d   : > { %v904_v54 = vadd.f32 %v1506_v53, %v1380_v52  ;;  %v898_v55 = vpop.f32.mrb[1].mxu0 }
 0x29e   : > { %v899_v56 = vadd.f32 %v1380_v52, %v898_v55 }
 0x29f   : > { %v978_v59 = vmax.f32 %v904_v54, 0.0 }
 0x2a0   : > { %v977_v57 = vmax.f32 %v899_v56, 0.0  ;;  %v1509_v58 = vpop.f32.mrb[2].mxu0 }
 0x2a1   : > { %v914_v60 = vadd.f32 %v1509_v58, %v1380_v52  ;;  %v908_v61 = vpop.f32.mrb[3].mxu0 }
 0x2a2   : > { %v909_v62 = vadd.f32 %v1380_v52, %v908_v61  ;;  %1532 = vmatprep.mubr.msk.f32.mxu1 %vm783_vm10, %v977_v57 }
 0x2a3   : > { %1533 = vmatmul.mubr.msk.f32.vlgmr.msra.gmra.mrb[0].mxu1 %vm783_vm10, %v978_v59  ;;  %v980_v1 = vmax.f32 %v914_v60, 0.0 }
 0x2a4   : > { %v979_v63 = vmax.f32 %v909_v62, 0.0  ;;  %v1512_v0 = vpop.f32.mrb[4].mxu0 }
 0x2a5   : > { %v924_v2 = vadd.f32 %v1512_v0, %v1380_v52  ;;  %v918_v3 = vpop.f32.mrb[5].mxu0 }
 0x2a6   : > { %v919_v4 = vadd.f32 %v1380_v52, %v918_v3  ;;  %1535 = vmatprep.mubr.msk.f32.mxu1 %vm783_vm10, %v979_v63 }
 0x2a7   : > { %1536 = vmatmul.mubr.msk.f32.gmra.mrb[2].mxu1 %vm783_vm10, %v980_v1  ;;  %v982_v7 = vmax.f32 %v924_v2, 0.0 }
 0x2a8   : > { %v981_v5 = vmax.f32 %v919_v4, 0.0  ;;  %v1515_v6 = vpop.f32.mrb[6].mxu0 }
 0x2a9   : > { %v934_v8 = vadd.f32 %v1515_v6, %v1380_v52  ;;  %v928_v9 = vpop.f32.mrb[7].mxu0 }
 0x2aa   : > { %v929_v10 = vadd.f32 %v1380_v52, %v928_v9  ;;  %1538 = vmatprep.mubr.msk.f32.mxu1 %vm783_vm10, %v981_v5 }
 0x2ab   : > { %1539 = vmatmul.mubr.msk.f32.gmra.mrb[4].mxu1 %vm783_vm10, %v982_v7  ;;  %v984_v13 = vmax.f32 %v934_v8, 0.0 }
 0x2ac   : > { %v983_v11 = vmax.f32 %v929_v10, 0.0  ;;  %v1518_v12 = vpop.f32.mrb[8].mxu0 }
 0x2ad   : > { %v944_v14 = vadd.f32 %v1518_v12, %v1380_v52  ;;  %v938_v15 = vpop.f32.mrb[9].mxu0 }
 0x2ae   : > { %v939_v16 = vadd.f32 %v1380_v52, %v938_v15  ;;  %1541 = vmatprep.mubr.msk.f32.mxu1 %vm783_vm10, %v983_v11 }
 0x2af   : > { %1542 = vmatmul.mubr.msk.f32.gmra.mrb[6].mxu1 %vm783_vm10, %v984_v13  ;;  %v986_v19 = vmax.f32 %v944_v14, 0.0 }
 0x2b0   : > { %v985_v17 = vmax.f32 %v939_v16, 0.0  ;;  %v1521_v18 = vpop.f32.mrb[10].mxu0 }
 0x2b1   : > { %v954_v20 = vadd.f32 %v1521_v18, %v1380_v52  ;;  %v948_v21 = vpop.f32.mrb[11].mxu0 }
 0x2b2   : > { %v949_v22 = vadd.f32 %v1380_v52, %v948_v21  ;;  %1544 = vmatprep.mubr.msk.f32.mxu1 %vm783_vm10, %v985_v17 }
 0x2b3   : > { %1545 = vmatmul.mubr.msk.f32.gmra.mrb[8].mxu1 %vm783_vm10, %v986_v19  ;;  %v988_v25 = vmax.f32 %v954_v20, 0.0 }
 0x2b4   : > { %v987_v23 = vmax.f32 %v949_v22, 0.0  ;;  %v1524_v24 = vpop.f32.mrb[12].mxu0 }
 0x2b5   : > { %v964_v26 = vadd.f32 %v1524_v24, %v1380_v52  ;;  %v958_v27 = vpop.f32.mrb[13].mxu0 }
 0x2b6   : > { %v959_v28 = vadd.f32 %v1380_v52, %v958_v27  ;;  %1547 = vmatprep.mubr.msk.f32.mxu1 %vm783_vm10, %v987_v23 }
 0x2b7   : > { %1548 = vmatmul.mubr.msk.f32.gmra.mrb[10].mxu1 %vm783_vm10, %v988_v25  ;;  %v990_v32 = vmax.f32 %v964_v26, 0.0 }
 0x2b8   : > { %v989_v30 = vmax.f32 %v959_v28, 0.0  ;;  %v1527_v29 = vpop.f32.mrb[14].mxu0 }
 0x2b9   : > { %v974_v33 = vadd.f32 %v1527_v29, %v1380_v52  ;;  %v968_v34 = vpop.f32.mrb[15].mxu0 }
 0x2ba   : > { %v969_v31 = vadd.f32 %v1380_v52, %v968_v34  ;;  %1550 = vmatprep.mubr.msk.f32.mxu1 %vm783_vm10, %v989_v30 }
 0x2bb   : > { %1551 = vmatmul.mubr.msk.f32.gmra.mrb[12].mxu1 %vm783_vm10, %v990_v32  ;;  %v992_v36 = vmax.f32 %v974_v33, 0.0 }
 0x2bc   : > { %v991_v35 = vmax.f32 %v969_v31, 0.0 }
 0x2be   : > { %1553 = vmatprep.mubr.msk.f32.mxu1 %vm783_vm10, %v991_v35 }
 0x2bf   : > { %1554 = vmatmul.mubr.msk.f32.gmra.mrb[14].mxu1 %vm783_vm10, %v992_v36 }
 0x376   : > { %v1534_v38 = vpop.f32.mrb[0].mxu1 }
 0x377   : > { %v1122_v39 = vadd.f32 %v1534_v38, %v1397_v37  ;;  %v1116_v40 = vpop.f32.mrb[1].mxu1 }
 0x378   : > { %v1117_v41 = vadd.f32 %v1397_v37, %v1116_v40 }
 0x379   : > { %v1196_v42 = vmax.f32 %v1122_v39, 0.0 }
 0x37a   : > { %v1195_v43 = vmax.f32 %v1117_v41, 0.0  ;;  %v1537_v44 = vpop.f32.mrb[2].mxu1 }
 0x37b   : > { %1212 = vst.msk [vmem:[%s1823_s27 + $0x8] sm:$0xff] %vm783_vm10, %v1196_v42  ;;  %v1132_v45 = vadd.f32 %v1537_v44, %v1397_v37  ;;  %v1126_v46 = vpop.f32.mrb[3].mxu1 }
 0x37c   : > { %1211 = vst.msk [vmem:[%s1823_s27] sm:$0xff] %vm783_vm10, %v1195_v43  ;;  %v1127_v47 = vadd.f32 %v1397_v37, %v1126_v46 }
 0x37d   : > { %v1198_v48 = vmax.f32 %v1132_v45, 0.0 }
 0x37e   : > { %v1197_v49 = vmax.f32 %v1127_v47, 0.0  ;;  %v1540_v50 = vpop.f32.mrb[4].mxu1 }
 0x37f   : > { %1214 = vst.msk [vmem:[%s1823_s27 + $0x18] sm:$0xff] %vm783_vm10, %v1198_v48  ;;  %v1142_v51 = vadd.f32 %v1540_v50, %v1397_v37  ;;  %v1136_v52 = vpop.f32.mrb[5].mxu1 }
 0x380   : > { %1213 = vst.msk [vmem:[%s1823_s27 + $0x10] sm:$0xff] %vm783_vm10, %v1197_v49  ;;  %v1137_v53 = vadd.f32 %v1397_v37, %v1136_v52 }
 0x381   : > { %v1200_v54 = vmax.f32 %v1142_v51, 0.0 }
 0x382   : > { %v1199_v55 = vmax.f32 %v1137_v53, 0.0  ;;  %v1543_v56 = vpop.f32.mrb[6].mxu1 }
 0x383   : > { %1216 = vst.msk [vmem:[%s1823_s27 + $0x28] sm:$0xff] %vm783_vm10, %v1200_v54  ;;  %v1152_v57 = vadd.f32 %v1543_v56, %v1397_v37  ;;  %v1146_v58 = vpop.f32.mrb[7].mxu1 }
 0x384   : > { %1215 = vst.msk [vmem:[%s1823_s27 + $0x20] sm:$0xff] %vm783_vm10, %v1199_v55  ;;  %v1147_v59 = vadd.f32 %v1397_v37, %v1146_v58 }
 0x385   : > { %v1202_v60 = vmax.f32 %v1152_v57, 0.0 }
 0x386   : > { %v1201_v61 = vmax.f32 %v1147_v59, 0.0  ;;  %v1546_v62 = vpop.f32.mrb[8].mxu1 }
 0x387   : > { %1218 = vst.msk [vmem:[%s1823_s27 + $0x38] sm:$0xff] %vm783_vm10, %v1202_v60  ;;  %v1162_v63 = vadd.f32 %v1546_v62, %v1397_v37  ;;  %v1156_v0 = vpop.f32.mrb[9].mxu1 }
 0x388   : > { %1217 = vst.msk [vmem:[%s1823_s27 + $0x30] sm:$0xff] %vm783_vm10, %v1201_v61  ;;  %v1157_v1 = vadd.f32 %v1397_v37, %v1156_v0 }
 0x389   : > { %v1204_v2 = vmax.f32 %v1162_v63, 0.0 }
 0x38a   : > { %v1203_v3 = vmax.f32 %v1157_v1, 0.0  ;;  %v1549_v4 = vpop.f32.mrb[10].mxu1 }
 0x38b   : > { %1220 = vst.msk [vmem:[%s1823_s27 + $0x48] sm:$0xff] %vm783_vm10, %v1204_v2  ;;  %v1172_v5 = vadd.f32 %v1549_v4, %v1397_v37  ;;  %v1166_v6 = vpop.f32.mrb[11].mxu1 }
 0x38c   : > { %1219 = vst.msk [vmem:[%s1823_s27 + $0x40] sm:$0xff] %vm783_vm10, %v1203_v3  ;;  %v1167_v7 = vadd.f32 %v1397_v37, %v1166_v6 }
 0x38d   : > { %v1206_v8 = vmax.f32 %v1172_v5, 0.0 }
 0x38e   : > { %v1205_v9 = vmax.f32 %v1167_v7, 0.0  ;;  %v1552_v10 = vpop.f32.mrb[12].mxu1 }
 0x38f   : > { %1222 = vst.msk [vmem:[%s1823_s27 + $0x58] sm:$0xff] %vm783_vm10, %v1206_v8  ;;  %v1182_v11 = vadd.f32 %v1552_v10, %v1397_v37  ;;  %v1176_v12 = vpop.f32.mrb[13].mxu1 }
 0x390   : > { %1221 = vst.msk [vmem:[%s1823_s27 + $0x50] sm:$0xff] %vm783_vm10, %v1205_v9  ;;  %v1177_v13 = vadd.f32 %v1397_v37, %v1176_v12 }
 0x391   : > { %v1208_v14 = vmax.f32 %v1182_v11, 0.0 }
 0x392   : > { %v1207_v15 = vmax.f32 %v1177_v13, 0.0  ;;  %v1555_v16 = vpop.f32.mrb[14].mxu1 }
 0x393   : > { %1224 = vst.msk [vmem:[%s1823_s27 + $0x68] sm:$0xff] %vm783_vm10, %v1208_v14  ;;  %v1192_v17 = vadd.f32 %v1555_v16, %v1397_v37  ;;  %v1186_v18 = vpop.f32.mrb[15].mxu1 }
 0x394   : > { %1223 = vst.msk [vmem:[%s1823_s27 + $0x60] sm:$0xff] %vm783_vm10, %v1207_v15  ;;  %v1187_v19 = vadd.f32 %v1397_v37, %v1186_v18 }
 0x395   : > { %v1210_v20 = vmax.f32 %v1192_v17, 0.0 }
 0x396   : > { %v1209_v21 = vmax.f32 %v1187_v19, 0.0 }
 0x397   : > { %1226 = vst.msk [vmem:[%s1823_s27 + $0x78] sm:$0xff] %vm783_vm10, %v1210_v20 }
 0x398   : > { %1225 = vst.msk [vmem:[%s1823_s27 + $0x70] sm:$0xff] %vm783_vm10, %v1209_v21 }
 0x399 PF: > { %p1227_p5 = scmp.ge.s32.totalorder %s1843_s28, %s1813_s19 }
 0x39b   : > { %p1228_p6 = pnand %p1227_p5, %p625_p3 }
 0x39c   : > { %vm1232_vm11 = vcmask (!%p1228_p6), 130048   ;;  %v1725_v22 = vmov (!%p1228_p6), 0.0  }
 0x39d   : > { %1231 = sbr.rel (%p1228_p6) target bundleno = 933 (0x3a5), region = 60  ;;  %1233 = vst.msk [vmem:[%s1823_s27] sm:$0xff] (!%p1228_p6), %vm1232_vm11, %v1725_v22  ;;  %1234 = vst.msk [vmem:[%s1823_s27 + $0x8] sm:$0xff] (!%p1228_p6), %vm1232_vm11, %v1725_v22 }
 0x39e   : > { %1235 = vst.msk [vmem:[%s1823_s27 + $0x10] sm:$0xff] (!%p1228_p6), %vm1232_vm11, %v1725_v22  ;;  %1236 = vst.msk [vmem:[%s1823_s27 + $0x18] sm:$0xff] (!%p1228_p6), %vm1232_vm11, %v1725_v22 }
 0x39f   : > { %1237 = vst.msk [vmem:[%s1823_s27 + $0x20] sm:$0xff] (!%p1228_p6), %vm1232_vm11, %v1725_v22  ;;  %1238 = vst.msk [vmem:[%s1823_s27 + $0x28] sm:$0xff] (!%p1228_p6), %vm1232_vm11, %v1725_v22 }
 0x3a0   : > { %1239 = vst.msk [vmem:[%s1823_s27 + $0x30] sm:$0xff] (!%p1228_p6), %vm1232_vm11, %v1725_v22  ;;  %1240 = vst.msk [vmem:[%s1823_s27 + $0x38] sm:$0xff] (!%p1228_p6), %vm1232_vm11, %v1725_v22 }
 0x3a1   : > { %1241 = vst.msk [vmem:[%s1823_s27 + $0x40] sm:$0xff] (!%p1228_p6), %vm1232_vm11, %v1725_v22  ;;  %1242 = vst.msk [vmem:[%s1823_s27 + $0x48] sm:$0xff] (!%p1228_p6), %vm1232_vm11, %v1725_v22 }
 0x3a2   : > { %1243 = vst.msk [vmem:[%s1823_s27 + $0x50] sm:$0xff] (!%p1228_p6), %vm1232_vm11, %v1725_v22  ;;  %1244 = vst.msk [vmem:[%s1823_s27 + $0x58] sm:$0xff] (!%p1228_p6), %vm1232_vm11, %v1725_v22 }
 0x3a3   : > { %1245 = vst.msk [vmem:[%s1823_s27 + $0x60] sm:$0xff] (!%p1228_p6), %vm1232_vm11, %v1725_v22  ;;  %1246 = vst.msk [vmem:[%s1823_s27 + $0x68] sm:$0xff] (!%p1228_p6), %vm1232_vm11, %v1725_v22 }
 0x3a4   : > { %1247 = vst.msk [vmem:[%s1823_s27 + $0x70] sm:$0xff] %vm1232_vm11, %v1725_v22  ;;  %1248 = vst.msk [vmem:[%s1823_s27 + $0x78] sm:$0xff] %vm1232_vm11, %v1725_v22 }
 0x3a5 PF: > { %s23_s9 = sadd.s32 1, %s1719_s9   ;;  %s2154_s29 = smov %s1711_s8 }
 0x3a6   : > { %p20_p7 = scmp.ge.s32.totalorder %s23_s9, 6   ;;  %s2155_s30 = smov %s1715_s0 }
 0x3a7   : > { %s2156_s8 = smov %s2159_s10  ;;  %s2157_s0 = smov %s2163_s11 }
 0x3a8   :  { %22 = sbr.rel (!%p20_p7) target bundleno = 18 (0x12), region = 93 }

</bundles_post_ra>
